<compile_context>
chip_gen: v5e
topology: v5e:2x2
jax: 0.10.0
libtpu: 0.0.40
codegen_flags: <defaults>
</compile_context>

<pallas_src>
import functools

import jax
import jax.numpy as jnp
from jax.experimental import pallas as pl
from jax.experimental.pallas import tpu as pltpu

LANE = 128
SUBLANE = 8


def _round_up(x, m):
    return ((x + m - 1) // m) * m


def critic_kernel(x_ref, w1_ref, b1_ref, w2_ref, b2_ref, w3_ref, b3_ref, out_ref):
    """Fused 3-layer MLP for one batch tile.

    All hidden/output widths are pre-padded to 128 lanes, so every matmul and
    store is full-lane / unmasked.  Accumulation is f32 regardless of the
    (possibly bf16) weight/input dtype.
    """
    x = x_ref[...]                                                     # [TB, F]

    h1 = jnp.dot(x, w1_ref[...], preferred_element_type=jnp.float32) + b1_ref[...]
    h1 = jnp.maximum(h1, 0.0)                                          # [TB, 128]
    h1 = h1.astype(w2_ref.dtype)                                       # bf16 path: narrow MXU lhs

    h2 = jnp.dot(h1, w2_ref[...], preferred_element_type=jnp.float32) + b2_ref[...]
    h2 = jnp.maximum(h2, 0.0)                                          # [TB, 128] (cols 64: are 0)
    h2 = h2.astype(w3_ref.dtype)

    out = jnp.dot(h2, w3_ref[...], preferred_element_type=jnp.float32) + b3_ref[...]
    out_ref[...] = out.astype(out_ref.dtype)                           # [TB, 128] (cols 1: are 0)


@functools.partial(jax.jit, static_argnames=("batch_tile", "compute_dtype"))
def critic_forward(x, params, batch_tile=256, compute_dtype=jnp.float32):
    """x: [B, feature_dim] -> value: [B, 1] float32."""
    w1, b1, w2, b2, w3, b3 = params
    B, F = x.shape
    H1 = w1.shape[1]   # 128
    H2 = w2.shape[1]   # 64
    O = w3.shape[1]    # 1

    # --- Zero-pad narrow dims up to full 128-lane width (exact; see header). ---
    H1p = _round_up(H1, LANE)   # 128
    H2p = _round_up(H2, LANE)   # 128
    Op = _round_up(O, LANE)     # 128

    cd = compute_dtype
    w1p = jnp.zeros((F, H1p), cd).at[:, :H1].set(w1.astype(cd))
    w2p = jnp.zeros((H1p, H2p), cd).at[:H1, :H2].set(w2.astype(cd))
    w3p = jnp.zeros((H2p, Op), cd).at[:H2, :O].set(w3.astype(cd))
    # Biases stay f32 (added to the f32 accumulator).
    b1p = jnp.zeros((1, H1p), jnp.float32).at[:, :H1].set(b1.astype(jnp.float32))
    b2p = jnp.zeros((1, H2p), jnp.float32).at[:, :H2].set(b2.astype(jnp.float32))
    b3p = jnp.zeros((1, Op), jnp.float32).at[:, :O].set(b3.astype(jnp.float32))

    # --- Batch tiling: big tiles, padded batch, no divisibility requirement. ---
    tile_b = min(batch_tile, _round_up(B, SUBLANE))
    tile_b = max(SUBLANE, (tile_b // SUBLANE) * SUBLANE)   # multiple of 8 sublanes
    Bp = _round_up(B, tile_b)
    xp = x.astype(cd)
    if Bp != B:
        xp = jnp.pad(xp, ((0, Bp - B), (0, 0)))
    grid = (Bp // tile_b,)

    # Weights/biases are tiny and use a constant index_map, so they are DMA'd
    # once and re-used across all grid steps.
    full = lambda shape: pl.BlockSpec(shape, lambda i: (0, 0))

    out_padded = pl.pallas_call(
        critic_kernel,
        out_shape=jax.ShapeDtypeStruct((Bp, Op), jnp.float32),
        grid_spec=pltpu.PrefetchScalarGridSpec(
            num_scalar_prefetch=0,
            grid=grid,
            in_specs=[
                pl.BlockSpec((tile_b, F), lambda i: (i, 0)),   # x tile
                full((F, H1p)), full((1, H1p)),                # layer 1
                full((H1p, H2p)), full((1, H2p)),              # layer 2
                full((H2p, Op)), full((1, Op)),                # layer 3
            ],
            out_specs=pl.BlockSpec((tile_b, Op), lambda i: (i, 0)),
        ),
        compiler_params=pltpu.CompilerParams(
            dimension_semantics=("parallel",),
        ),
    )(xp, w1p, b1p, w2p, b2p, w3p, b3p)

    return out_padded[:B, :O]


def init_params(key, feature_dim):
    """Deterministic PyTorch-style init: U(-1/sqrt(fan_in), 1/sqrt(fan_in))."""
    dims = [(feature_dim, 128), (128, 64), (64, 1)]
    params = []
    for (fan_in, fan_out) in dims:
        key, kw, kb = jax.random.split(key, 3)
        bound = 1.0 / jnp.sqrt(float(fan_in))
        w = jax.random.uniform(kw, (fan_in, fan_out), jnp.float32, -bound, bound)
        b = jax.random.uniform(kb, (1, fan_out), jnp.float32, -bound, bound)
        params += [w, b]
    return tuple(params)


def critic_reference(x, params):
    """Pure-JAX reference for correctness checking."""
    w1, b1, w2, b2, w3, b3 = params
    h1 = jnp.maximum(x @ w1 + b1, 0.0)
    h2 = jnp.maximum(h1 @ w2 + b2, 0.0)
    return h2 @ w3 + b3


if __name__ == "__main__":
    key = jax.random.PRNGKey(0)
    feature_dim = 32

    k_params, k_x1, k_x2 = jax.random.split(key, 3)
    params = init_params(k_params, feature_dim)

    # Small test case (batch=8).
    x1 = jax.random.normal(k_x1, (8, feature_dim), jnp.float32)
    out1 = critic_forward(x1, params)
    jax.block_until_ready(out1)
    ref1 = critic_reference(x1, params)
    assert out1.shape == (8, 1)
    assert jnp.allclose(out1, ref1, atol=1e-5, rtol=1e-5), "mismatch vs reference (batch=8)"

    # Non-tile-multiple batch exercises the padding path (batch=37, tile=32).
    x2 = jax.random.normal(k_x2, (37, feature_dim), jnp.float32)
    out2 = critic_forward(x2, params, batch_tile=32)
    jax.block_until_ready(out2)
    ref2 = critic_reference(x2, params)
    assert out2.shape == (37, 1)
    assert jnp.allclose(out2, ref2, atol=1e-5, rtol=1e-5), "mismatch vs reference (batch=37)"

    print("KERNEL_OK")
</pallas_src>

<mosaic_0001>
module attributes {stable_mosaic.version = 11 : i64} {
  func.func @critic_kernel(%arg0: i32, %arg1: memref<8x32xf32, #tpu.memory_space<vmem>>, %arg2: memref<32x128xf32, #tpu.memory_space<vmem>>, %arg3: memref<1x128xf32, #tpu.memory_space<vmem>>, %arg4: memref<128x128xf32, #tpu.memory_space<vmem>>, %arg5: memref<1x128xf32, #tpu.memory_space<vmem>>, %arg6: memref<128x128xf32, #tpu.memory_space<vmem>>, %arg7: memref<1x128xf32, #tpu.memory_space<vmem>>, %arg8: memref<8x128xf32, #tpu.memory_space<vmem>>) attributes {dimension_semantics = [#tpu.dimension_semantics<parallel>], iteration_bounds = array<i64: 1>, scalar_prefetch = 0 : i64, scratch_operands = 0 : i64, tpu.core_type = #tpu.core_type<tc>, window_params = [{transform_indices = @transform_0, window_bounds = array<i64: 8, 32>}, {pipeline_mode = #tpu.pipeline_mode<synchronous>, transform_indices = @transform_1, window_bounds = array<i64: 32, 128>}, {pipeline_mode = #tpu.pipeline_mode<synchronous>, transform_indices = @transform_2, window_bounds = array<i64: 1, 128>}, {pipeline_mode = #tpu.pipeline_mode<synchronous>, transform_indices = @transform_3, window_bounds = array<i64: 128, 128>}, {pipeline_mode = #tpu.pipeline_mode<synchronous>, transform_indices = @transform_4, window_bounds = array<i64: 1, 128>}, {pipeline_mode = #tpu.pipeline_mode<synchronous>, transform_indices = @transform_5, window_bounds = array<i64: 128, 128>}, {pipeline_mode = #tpu.pipeline_mode<synchronous>, transform_indices = @transform_6, window_bounds = array<i64: 1, 128>}, {transform_indices = @transform_7, window_bounds = array<i64: 8, 128>}]} {
    %c0 = arith.constant 0 : index
    %c0_0 = arith.constant 0 : index
    %0 = vector.load %arg1[%c0, %c0_0] : memref<8x32xf32, #tpu.memory_space<vmem>>, vector<8x32xf32>
    %c0_1 = arith.constant 0 : index
    %c0_2 = arith.constant 0 : index
    %1 = vector.load %arg2[%c0_1, %c0_2] : memref<32x128xf32, #tpu.memory_space<vmem>>, vector<32x128xf32>
    %cst = arith.constant dense<0.000000e+00> : vector<8x128xf32>
    %2 = tpu.matmul %0, %1, %cst {dimension_numbers = #tpu.dot_dimension_numbers<[1], [0], [0], [1], [0, 0, 1, 1], [], []>} : vector<8x32xf32>, vector<32x128xf32>, vector<8x128xf32> -> vector<8x128xf32>
    %c0_3 = arith.constant 0 : index
    %c0_4 = arith.constant 0 : index
    %3 = vector.load %arg3[%c0_3, %c0_4] : memref<1x128xf32, #tpu.memory_space<vmem>>, vector<1x128xf32>
    %4 = vector.broadcast %3 : vector<1x128xf32> to vector<8x128xf32>
    %5 = arith.addf %2, %4 : vector<8x128xf32>
    %cst_5 = arith.constant 0.000000e+00 : f32
    %6 = vector.broadcast %cst_5 : f32 to vector<8x128xf32>
    %7 = arith.maximumf %5, %6 : vector<8x128xf32>
    %c0_6 = arith.constant 0 : index
    %c0_7 = arith.constant 0 : index
    %8 = vector.load %arg4[%c0_6, %c0_7] : memref<128x128xf32, #tpu.memory_space<vmem>>, vector<128x128xf32>
    %cst_8 = arith.constant dense<0.000000e+00> : vector<8x128xf32>
    %9 = tpu.matmul %7, %8, %cst_8 {dimension_numbers = #tpu.dot_dimension_numbers<[1], [0], [0], [1], [0, 0, 1, 1], [], []>} : vector<8x128xf32>, vector<128x128xf32>, vector<8x128xf32> -> vector<8x128xf32>
    %c0_9 = arith.constant 0 : index
    %c0_10 = arith.constant 0 : index
    %10 = vector.load %arg5[%c0_9, %c0_10] : memref<1x128xf32, #tpu.memory_space<vmem>>, vector<1x128xf32>
    %11 = vector.broadcast %10 : vector<1x128xf32> to vector<8x128xf32>
    %12 = arith.addf %9, %11 : vector<8x128xf32>
    %cst_11 = arith.constant 0.000000e+00 : f32
    %13 = vector.broadcast %cst_11 : f32 to vector<8x128xf32>
    %14 = arith.maximumf %12, %13 : vector<8x128xf32>
    %c0_12 = arith.constant 0 : index
    %c0_13 = arith.constant 0 : index
    %15 = vector.load %arg6[%c0_12, %c0_13] : memref<128x128xf32, #tpu.memory_space<vmem>>, vector<128x128xf32>
    %cst_14 = arith.constant dense<0.000000e+00> : vector<8x128xf32>
    %16 = tpu.matmul %14, %15, %cst_14 {dimension_numbers = #tpu.dot_dimension_numbers<[1], [0], [0], [1], [0, 0, 1, 1], [], []>} : vector<8x128xf32>, vector<128x128xf32>, vector<8x128xf32> -> vector<8x128xf32>
    %c0_15 = arith.constant 0 : index
    %c0_16 = arith.constant 0 : index
    %17 = vector.load %arg7[%c0_15, %c0_16] : memref<1x128xf32, #tpu.memory_space<vmem>>, vector<1x128xf32>
    %18 = vector.broadcast %17 : vector<1x128xf32> to vector<8x128xf32>
    %19 = arith.addf %16, %18 : vector<8x128xf32>
    %c0_17 = arith.constant 0 : index
    %c0_18 = arith.constant 0 : index
    %20 = vector.load %arg8[%c0_17, %c0_18] : memref<8x128xf32, #tpu.memory_space<vmem>>, vector<8x128xf32>
    tpu.vector_store %arg8[%c0_17, %c0_18], %19 {strides = array<i32>} : memref<8x128xf32, #tpu.memory_space<vmem>>, vector<8x128xf32>,
    return
  }
  func.func @transform_0(%arg0: i32) -> (i32, i32) {
    %c0_i32 = arith.constant 0 : i32
    %c0_i32_0 = arith.constant 0 : i32
    return %arg0, %c0_i32 : i32, i32
  }
  func.func @transform_1(%arg0: i32) -> (i32, i32) {
    %c0_i32 = arith.constant 0 : i32
    %c0_i32_0 = arith.constant 0 : i32
    %c0_i32_1 = arith.constant 0 : i32
    return %c0_i32, %c0_i32_0 : i32, i32
  }
  func.func @transform_2(%arg0: i32) -> (i32, i32) {
    %c0_i32 = arith.constant 0 : i32
    %c0_i32_0 = arith.constant 0 : i32
    %c0_i32_1 = arith.constant 0 : i32
    return %c0_i32, %c0_i32_0 : i32, i32
  }
  func.func @transform_3(%arg0: i32) -> (i32, i32) {
    %c0_i32 = arith.constant 0 : i32
    %c0_i32_0 = arith.constant 0 : i32
    %c0_i32_1 = arith.constant 0 : i32
    return %c0_i32, %c0_i32_0 : i32, i32
  }
  func.func @transform_4(%arg0: i32) -> (i32, i32) {
    %c0_i32 = arith.constant 0 : i32
    %c0_i32_0 = arith.constant 0 : i32
    %c0_i32_1 = arith.constant 0 : i32
    return %c0_i32, %c0_i32_0 : i32, i32
  }
  func.func @transform_5(%arg0: i32) -> (i32, i32) {
    %c0_i32 = arith.constant 0 : i32
    %c0_i32_0 = arith.constant 0 : i32
    %c0_i32_1 = arith.constant 0 : i32
    return %c0_i32, %c0_i32_0 : i32, i32
  }
  func.func @transform_6(%arg0: i32) -> (i32, i32) {
    %c0_i32 = arith.constant 0 : i32
    %c0_i32_0 = arith.constant 0 : i32
    %c0_i32_1 = arith.constant 0 : i32
    return %c0_i32, %c0_i32_0 : i32, i32
  }
  func.func @transform_7(%arg0: i32) -> (i32, i32) {
    %c0_i32 = arith.constant 0 : i32
    %c0_i32_0 = arith.constant 0 : i32
    return %arg0, %c0_i32 : i32, i32
  }
}

</mosaic_0001>

<bundles_post_ra>
// kernel: critic_forward.1
= control target key start
LH: loop header
LB: loop body
LE: loop exit
PB: predicated region body
PF: predicated region fallthrough
CT: control target
= control target key end

     0   :  { %vm35_vm0 = vcmask 261120   ;;  %s313_s1 = inlined_call_operand.vmem [shape: f32[32,128], index: 1, kind: input, shape index: {}]   ;;  %s314_s3 = inlined_call_operand.vmem [shape: f32[128,128], index: 3, kind: input, shape index: {}]   ;;  %s315_s0 = inlined_call_operand.vmem [shape: f32[8,32], index: 0, kind: input, shape index: {}]   ;;  %s316_s2 = inlined_call_operand.vmem [shape: f32[1,128], index: 2, kind: input, shape index: {}]   ;;  %s317_s4 = inlined_call_operand.vmem [shape: f32[1,128], index: 4, kind: input, shape index: {}]   ;;  %s318_s5 = inlined_call_operand.vmem [shape: f32[128,128], index: 5, kind: input, shape index: {}]   ;;  %s319_s6 = inlined_call_operand.vmem [shape: f32[1,128], index: 6, kind: input, shape index: {}]   ;;  %s320_s7 = inlined_call_operand.vmem [shape: f32[8,128], index: 7, kind: output, shape index: {}]  }
   0x1   :  { %v30_v0 = vld [vmem:[%s313_s1 + $0x18] sm:$0xff]  ;;  %v29_v1 = vld [vmem:[%s313_s1 + $0x10] sm:$0xff]  ;;  %v28_v3 = vld [vmem:[%s313_s1 + $0x8] sm:$0xff] }
   0x2   :  { %51 = vmatpush.msra.mxu0 %v30_v0  ;;  %v75_v2 = vld [vmem:[%s314_s3 + $0x78] sm:$0xff]  ;;  %v74_v4 = vld [vmem:[%s314_s3 + $0x70] sm:$0xff]  ;;  %v73_v5 = vld [vmem:[%s314_s3 + $0x68] sm:$0xff] }
   0x3   :  { %80 = vmatpush.msra.mxu1 %v75_v2  ;;  %v27_v6 = vld [vmem:[%s313_s1] sm:$0xff]  ;;  %v71_v9 = vld [vmem:[%s314_s3 + $0x58] sm:$0xff]  ;;  %v70_v10 = vld [vmem:[%s314_s3 + $0x50] sm:$0xff] }
   0x4   :  { %52 = vmatpush.msra.mxu0 %v29_v1  ;;  %v26_v7 = vld [vmem:[%s315_s0] sm:$0xff]  ;;  %v69_v11 = vld [vmem:[%s314_s3 + $0x48] sm:$0xff]  ;;  %v67_v13 = vld [vmem:[%s314_s3 + $0x38] sm:$0xff] }
   0x5   :  { %81 = vmatpush.msra.mxu1 %v74_v4  ;;  %v72_v8 = vld [vmem:[%s314_s3 + $0x60] sm:$0xff]  ;;  %v66_v14 = vld [vmem:[%s314_s3 + $0x30] sm:$0xff]  ;;  %v65_v15 = vld [vmem:[%s314_s3 + $0x28] sm:$0xff] }
   0x6   :  { %53 = vmatpush.msra.mxu0 %v28_v3  ;;  %v68_v12 = vld [vmem:[%s314_s3 + $0x40] sm:$0xff]  ;;  %v63_v17 = vld [vmem:[%s314_s3 + $0x18] sm:$0xff]  ;;  %v62_v18 = vld [vmem:[%s314_s3 + $0x10] sm:$0xff] }
   0x7   :  { %82 = vmatpush.msra.mxu1 %v73_v5  ;;  %v64_v16 = vld [vmem:[%s314_s3 + $0x20] sm:$0xff]  ;;  %v61_v19 = vld [vmem:[%s314_s3 + $0x8] sm:$0xff]  ;;  %v116_v21 = vld [vmem:[%s318_s5 + $0x78] sm:$0xff] }
   0x8   :  { %54 = vmatpush.msra.mxu0 %v27_v6  ;;  %v60_v20 = vld [vmem:[%s314_s3] sm:$0xff]  ;;  %v115_v22 = vld [vmem:[%s318_s5 + $0x70] sm:$0xff]  ;;  %121 = vmatpush.msra.mxu2 %v116_v21  ;;  %v114_v23 = vld [vmem:[%s318_s5 + $0x68] sm:$0xff] }
   0x9   :  { %146 = vmatmul.msk.f32.vlgmr.msra.gmra.mxu0 %vm35_vm0, %v26_v7  ;;  %83 = vmatpush.msra.mxu1 %v72_v8  ;;  %v113_v24 = vld [vmem:[%s318_s5 + $0x60] sm:$0xff]  ;;  %v112_v25 = vld [vmem:[%s318_s5 + $0x58] sm:$0xff]  ;;  %v111_v26 = vld [vmem:[%s318_s5 + $0x50] sm:$0xff] }
   0xa   :  { %122 = vmatpush.msra.mxu2 %v115_v22  ;;  %v110_v27 = vld [vmem:[%s318_s5 + $0x48] sm:$0xff]  ;;  %v109_v28 = vld [vmem:[%s318_s5 + $0x40] sm:$0xff]  ;;  %v108_v29 = vld [vmem:[%s318_s5 + $0x38] sm:$0xff] }
   0xb   :  { %84 = vmatpush.msra.mxu1 %v71_v9  ;;  %v107_v30 = vld [vmem:[%s318_s5 + $0x30] sm:$0xff]  ;;  %v106_v31 = vld [vmem:[%s318_s5 + $0x28] sm:$0xff]  ;;  %v105_v32 = vld [vmem:[%s318_s5 + $0x20] sm:$0xff] }
   0xc   :  { %123 = vmatpush.msra.mxu2 %v114_v23  ;;  %v104_v33 = vld [vmem:[%s318_s5 + $0x18] sm:$0xff]  ;;  %v147_v34 = vld [vmem:[%s316_s2] ss:$0 sm:$0xff]  ;;  %v103_v38 = vld [vmem:[%s318_s5 + $0x10] sm:$0xff] }
   0xd   :  { %85 = vmatpush.msra.mxu1 %v70_v10  ;;  %v102_v39 = vld [vmem:[%s318_s5 + $0x8] sm:$0xff]  ;;  %v101_v40 = vld [vmem:[%s318_s5] sm:$0xff] }
   0xe   :  { %124 = vmatpush.msra.mxu2 %v113_v24  ;;  %v148_v41 = vld [vmem:[%s317_s4] ss:$0 sm:$0xff] }
   0xf   :  { %86 = vmatpush.msra.mxu1 %v69_v11  ;;  %v149_v45 = vld [vmem:[%s319_s6] ss:$0 sm:$0xff] }
  0x10   :  { %125 = vmatpush.msra.mxu2 %v112_v25 }
  0x11   :  { %87 = vmatpush.msra.mxu1 %v68_v12 }
  0x12   :  { %126 = vmatpush.msra.mxu2 %v111_v26 }
  0x13   :  { %88 = vmatpush.msra.mxu1 %v67_v13 }
  0x14   :  { %127 = vmatpush.msra.mxu2 %v110_v27 }
  0x15   :  { %89 = vmatpush.msra.mxu1 %v66_v14 }
  0x16   :  { %128 = vmatpush.msra.mxu2 %v109_v28 }
  0x17   :  { %90 = vmatpush.msra.mxu1 %v65_v15 }
  0x18   :  { %129 = vmatpush.msra.mxu2 %v108_v29 }
  0x19   :  { %91 = vmatpush.msra.mxu1 %v64_v16 }
  0x1a   :  { %130 = vmatpush.msra.mxu2 %v107_v30 }
  0x1b   :  { %92 = vmatpush.msra.mxu1 %v63_v17 }
  0x1c   :  { %131 = vmatpush.msra.mxu2 %v106_v31 }
  0x1d   :  { %93 = vmatpush.msra.mxu1 %v62_v18 }
  0x1e   :  { %132 = vmatpush.msra.mxu2 %v105_v32 }
  0x1f   :  { %94 = vmatpush.msra.mxu1 %v61_v19 }
  0x20   :  { %133 = vmatpush.msra.mxu2 %v104_v33 }
  0x21   :  { %95 = vmatpush.msra.mxu1 %v60_v20 }
  0x22   :  { %134 = vmatpush.msra.mxu2 %v103_v38 }
  0x24   :  { %135 = vmatpush.msra.mxu2 %v102_v39 }
  0x26   :  { %136 = vmatpush.msra.mxu2 %v101_v40 }
  0x86   :  { %v56_v35 = vpop.f32.mrf.mxu0 }
  0x87   :  { %v57_v36 = vadd.f32 %v147_v34, %v56_v35 }
  0x89   :  { %v59_v37 = vmax.f32 %v57_v36, 0.0 }
  0x8b   :  { %96 = vmatmul.f32.vlgmr.msra.gmra.mxu1 %v59_v37 }
 0x108   :  { %v97_v42 = vpop.f32.mrf.mxu1 }
 0x109   :  { %v98_v43 = vadd.f32 %v148_v41, %v97_v42 }
 0x10b   :  { %v100_v44 = vmax.f32 %v98_v43, 0.0 }
 0x10d   :  { %137 = vmatmul.f32.vlgmr.msra.gmra.mxu2 %v100_v44 }
 0x190   :  { %v138_v46 = vpop.f32.mrf.mxu2 }
 0x191   :  { %v139_v47 = vadd.f32 %v149_v45, %v138_v46 }
 0x193   :  { %141 = vst [vmem:[%s320_s7] sm:$0xff] %v139_v47 }

</bundles_post_ra>
